<compile_context>
chip_gen: v5e
topology: v5e:2x2
jax: 0.10.0
libtpu: 0.0.40
codegen_flags: <defaults>
</compile_context>

<pallas_src>
import functools

import jax
import jax.numpy as jnp
from jax.experimental import pallas as pl
from jax.experimental.pallas import tpu as pltpu


def _round_up(x, m):
    return ((x + m - 1) // m) * m


def _pinn_kernel(x_ref, *refs, num_layers):
    """refs = (w0, b0, w1, b1, ..., w_{L-1}, b_{L-1}, out_ref).

    x_ref:   (D_in, Bt)        batch on lanes
    w_l:     (D_{l+1}, D_l)    transposed weights
    b_l:     (D_{l+1}, 1)      column bias, lane-broadcast
    out_ref: (D_out, Bt)
    """
    out_ref = refs[-1]
    param_refs = refs[:-1]

    h = x_ref[...]                                   # (D_in, Bt) f32
    for i in range(num_layers):
        w = param_refs[2 * i][...]                   # (D_{i+1}, D_i)
        b = param_refs[2 * i + 1][...]               # (D_{i+1}, 1)
        h = jnp.dot(w, h, preferred_element_type=jnp.float32) + b
        if i != num_layers - 1:
            h = jnp.tanh(h)
    out_ref[...] = h.astype(out_ref.dtype)


def pinn_forward(x, lb, ub, weights, biases, *, batch_tile=None):
    """Pallas forward pass of PhysicsInformedNN.

    x:       (N, D_in) float32  (physical-domain inputs)
    lb, ub:  (D_in,)   float32
    weights: list of (D_i, D_{i+1}) float32   (stored [in, out], as in __init__)
    biases:  list of (D_{i+1},)     float32
    Returns (N, D_out) float32.
    """
    n, d_in = x.shape
    num_layers = len(weights)
    d_out = weights[-1].shape[1]

    if batch_tile is None:
        # Large, lane-dense tiles; keep >= 2 grid steps when N is big enough so
        # both TensorCores are used on v7x.  VMEM is never a constraint here.
        if n <= 256:
            batch_tile = _round_up(n, 128)
        elif n <= 2 * 8192:
            batch_tile = _round_up((n + 1) // 2, 128)
        else:
            batch_tile = 8192
    assert batch_tile % 128 == 0

    grid_steps = -(-n // batch_tile)
    n_pad = grid_steps * batch_tile

    # Batch-on-lanes layout; pad ragged N on the lane axis (padded columns are
    # computed and sliced off — harmless, no divides happen in-kernel).
    xt = jnp.asarray(x, jnp.float32).T               # (d_in, n)
    if n_pad != n:
        xt = jnp.pad(xt, ((0, 0), (0, n_pad - n)))

    # Fold normalization 2*(X - lb)/(ub - lb) - 1 into layer 0.
    # NOTE: inherits inf/nan if ub == lb in some dim (same as the reference).
    lb = jnp.asarray(lb, jnp.float32).reshape(d_in)
    ub = jnp.asarray(ub, jnp.float32).reshape(d_in)
    s = 2.0 / (ub - lb)                              # (d_in,)
    t = -2.0 * lb / (ub - lb) - 1.0                  # (d_in,)

    w_t = [jnp.asarray(w, jnp.float32).T for w in weights]          # (D_out, D_in)
    b_c = [jnp.asarray(b, jnp.float32).reshape(-1, 1) for b in biases]
    b_c[0] = b_c[0] + (w_t[0] @ t).reshape(-1, 1)    # b0' = b0 + W0^T t
    w_t[0] = w_t[0] * s[None, :]                     # W0' = W0^T diag(s)

    in_specs = [pl.BlockSpec((d_in, batch_tile), lambda i: (0, i))]  # x tile
    params = []
    for w, b in zip(w_t, b_c):
        in_specs.append(pl.BlockSpec(w.shape, lambda i: (0, 0)))     # W_l (full)
        in_specs.append(pl.BlockSpec(b.shape, lambda i: (0, 0)))     # b_l (full)
        params.extend([w, b])

    out_spec = pl.BlockSpec((d_out, batch_tile), lambda i: (0, i))

    flops = 2 * n_pad * sum(int(w.shape[0]) * int(w.shape[1]) for w in w_t)
    transcendentals = n_pad * sum(int(w.shape[0]) for w in w_t[:-1])
    bytes_accessed = 4 * (int(xt.size) + n_pad * d_out
                          + sum(int(p.size) for p in params))

    kernel = functools.partial(_pinn_kernel, num_layers=num_layers)

    out_t = pl.pallas_call(
        kernel,
        out_shape=jax.ShapeDtypeStruct((d_out, n_pad), jnp.float32),
        grid=(grid_steps,),
        in_specs=in_specs,
        out_specs=out_spec,
        compiler_params=pltpu.CompilerParams(
            dimension_semantics=("parallel",),
        ),
        cost_estimate=pl.CostEstimate(
            flops=flops,
            transcendentals=transcendentals,
            bytes_accessed=bytes_accessed,
        ),
    )(xt, *params)

    return out_t[:, :n].T                            # (n, d_out)


def init_params(key, layerslist):
    """Xavier-normal weights (stored as [in, out]), zero biases — matches
    nn.init.xavier_normal_ / nn.init.zeros_ in the PyTorch __init__."""
    weights, biases = [], []
    for i in range(len(layerslist) - 1):
        fan_in, fan_out = layerslist[i], layerslist[i + 1]
        key, sub = jax.random.split(key)
        std = jnp.sqrt(2.0 / (fan_in + fan_out))
        w = std * jax.random.normal(sub, (fan_in, fan_out), dtype=jnp.float32)
        b = jnp.zeros((fan_out,), dtype=jnp.float32)
        weights.append(w)
        biases.append(b)
    return weights, biases


def pinn_forward_ref(x, lb, ub, weights, biases):
    """Pure-JAX reference (mirrors the PyTorch forward exactly)."""
    h = 2.0 * (x - lb) / (ub - lb) - 1.0
    h = h.astype(jnp.float32)
    for i, (w, b) in enumerate(zip(weights, biases)):
        h = h @ w + b
        if i != len(weights) - 1:
            h = jnp.tanh(h)
    return h


if __name__ == "__main__":
    key = jax.random.PRNGKey(0)

    # Typical Burgers-PINN layout: input (x, t) -> hidden 32 -> ... -> scalar u
    layerslist = [2, 32, 32, 32, 1]
    batch = 512

    key, kp, kx = jax.random.split(key, 3)
    weights, biases = init_params(kp, layerslist)

    lb = jnp.array([-1.0, 0.0], dtype=jnp.float32)
    ub = jnp.array([1.0, 1.0], dtype=jnp.float32)

    # Inputs in the physical domain [lb, ub]
    u01 = jax.random.uniform(kx, (batch, layerslist[0]), dtype=jnp.float32)
    x = lb + (ub - lb) * u01

    out = pinn_forward(x, lb, ub, weights, biases)   # auto tile: 256 x 2 steps
    out = jax.block_until_ready(out)

    ref = pinn_forward_ref(x, lb, ub, weights, biases)
    assert out.shape == (batch, layerslist[-1])
    assert jnp.allclose(out, ref, atol=1e-5, rtol=1e-4), "mismatch vs reference"

    # TODO(synk): loss_PDE / forward_f need autograd (u_x, u_t, u_xx); those
    # derivatives are not part of the forward pass and are left to jax.grad
    # applied to pinn_forward outside the kernel.

    print("KERNEL_OK")
</pallas_src>

<mosaic_0001>
module attributes {stable_mosaic.version = 11 : i64} {
  func.func @_pinn_kernel(%arg0: i32, %arg1: memref<2x256xf32, #tpu.memory_space<vmem>>, %arg2: memref<32x2xf32, #tpu.memory_space<vmem>>, %arg3: memref<32x1xf32, #tpu.memory_space<vmem>>, %arg4: memref<32x32xf32, #tpu.memory_space<vmem>>, %arg5: memref<32x1xf32, #tpu.memory_space<vmem>>, %arg6: memref<32x32xf32, #tpu.memory_space<vmem>>, %arg7: memref<32x1xf32, #tpu.memory_space<vmem>>, %arg8: memref<1x32xf32, #tpu.memory_space<vmem>>, %arg9: memref<1x1xf32, #tpu.memory_space<vmem>>, %arg10: memref<1x256xf32, #tpu.memory_space<vmem>>) attributes {dimension_semantics = [#tpu.dimension_semantics<parallel>], iteration_bounds = array<i64: 2>, scalar_prefetch = 0 : i64, scratch_operands = 0 : i64, tpu.core_type = #tpu.core_type<tc>, window_params = [{transform_indices = @transform_0, window_bounds = array<i64: 2, 256>}, {pipeline_mode = #tpu.pipeline_mode<synchronous>, transform_indices = @transform_1, window_bounds = array<i64: 32, 2>}, {pipeline_mode = #tpu.pipeline_mode<synchronous>, transform_indices = @transform_2, window_bounds = array<i64: 32, 1>}, {pipeline_mode = #tpu.pipeline_mode<synchronous>, transform_indices = @transform_3, window_bounds = array<i64: 32, 32>}, {pipeline_mode = #tpu.pipeline_mode<synchronous>, transform_indices = @transform_4, window_bounds = array<i64: 32, 1>}, {pipeline_mode = #tpu.pipeline_mode<synchronous>, transform_indices = @transform_5, window_bounds = array<i64: 32, 32>}, {pipeline_mode = #tpu.pipeline_mode<synchronous>, transform_indices = @transform_6, window_bounds = array<i64: 32, 1>}, {pipeline_mode = #tpu.pipeline_mode<synchronous>, transform_indices = @transform_7, window_bounds = array<i64: 1, 32>}, {pipeline_mode = #tpu.pipeline_mode<synchronous>, transform_indices = @transform_8, window_bounds = array<i64: 1, 1>}, {transform_indices = @transform_9, window_bounds = array<i64: 1, 256>}]} {
    %c0 = arith.constant 0 : index
    %c0_0 = arith.constant 0 : index
    %0 = vector.load %arg1[%c0, %c0_0] : memref<2x256xf32, #tpu.memory_space<vmem>>, vector<2x256xf32>
    %c0_1 = arith.constant 0 : index
    %c0_2 = arith.constant 0 : index
    %1 = vector.load %arg2[%c0_1, %c0_2] : memref<32x2xf32, #tpu.memory_space<vmem>>, vector<32x2xf32>
    %c0_3 = arith.constant 0 : index
    %c0_4 = arith.constant 0 : index
    %2 = vector.load %arg3[%c0_3, %c0_4] : memref<32x1xf32, #tpu.memory_space<vmem>>, vector<32x1xf32>
    %cst = arith.constant dense<0.000000e+00> : vector<32x256xf32>
    %3 = tpu.matmul %1, %0, %cst {dimension_numbers = #tpu.dot_dimension_numbers<[1], [0], [0], [1], [0, 0, 1, 1], [], []>} : vector<32x2xf32>, vector<2x256xf32>, vector<32x256xf32> -> vector<32x256xf32>
    %4 = vector.broadcast %2 : vector<32x1xf32> to vector<32x256xf32>
    %5 = arith.addf %3, %4 : vector<32x256xf32>
    %6 = math.tanh %5 : vector<32x256xf32>
    %c0_5 = arith.constant 0 : index
    %c0_6 = arith.constant 0 : index
    %7 = vector.load %arg4[%c0_5, %c0_6] : memref<32x32xf32, #tpu.memory_space<vmem>>, vector<32x32xf32>
    %c0_7 = arith.constant 0 : index
    %c0_8 = arith.constant 0 : index
    %8 = vector.load %arg5[%c0_7, %c0_8] : memref<32x1xf32, #tpu.memory_space<vmem>>, vector<32x1xf32>
    %cst_9 = arith.constant dense<0.000000e+00> : vector<32x256xf32>
    %9 = tpu.matmul %7, %6, %cst_9 {dimension_numbers = #tpu.dot_dimension_numbers<[1], [0], [0], [1], [0, 0, 1, 1], [], []>} : vector<32x32xf32>, vector<32x256xf32>, vector<32x256xf32> -> vector<32x256xf32>
    %10 = vector.broadcast %8 : vector<32x1xf32> to vector<32x256xf32>
    %11 = arith.addf %9, %10 : vector<32x256xf32>
    %12 = math.tanh %11 : vector<32x256xf32>
    %c0_10 = arith.constant 0 : index
    %c0_11 = arith.constant 0 : index
    %13 = vector.load %arg6[%c0_10, %c0_11] : memref<32x32xf32, #tpu.memory_space<vmem>>, vector<32x32xf32>
    %c0_12 = arith.constant 0 : index
    %c0_13 = arith.constant 0 : index
    %14 = vector.load %arg7[%c0_12, %c0_13] : memref<32x1xf32, #tpu.memory_space<vmem>>, vector<32x1xf32>
    %cst_14 = arith.constant dense<0.000000e+00> : vector<32x256xf32>
    %15 = tpu.matmul %13, %12, %cst_14 {dimension_numbers = #tpu.dot_dimension_numbers<[1], [0], [0], [1], [0, 0, 1, 1], [], []>} : vector<32x32xf32>, vector<32x256xf32>, vector<32x256xf32> -> vector<32x256xf32>
    %16 = vector.broadcast %14 : vector<32x1xf32> to vector<32x256xf32>
    %17 = arith.addf %15, %16 : vector<32x256xf32>
    %18 = math.tanh %17 : vector<32x256xf32>
    %c0_15 = arith.constant 0 : index
    %c0_16 = arith.constant 0 : index
    %19 = vector.load %arg8[%c0_15, %c0_16] : memref<1x32xf32, #tpu.memory_space<vmem>>, vector<1x32xf32>
    %c0_17 = arith.constant 0 : index
    %c0_18 = arith.constant 0 : index
    %20 = vector.load %arg9[%c0_17, %c0_18] : memref<1x1xf32, #tpu.memory_space<vmem>>, vector<1x1xf32>
    %cst_19 = arith.constant dense<0.000000e+00> : vector<1x256xf32>
    %21 = tpu.matmul %19, %18, %cst_19 {dimension_numbers = #tpu.dot_dimension_numbers<[1], [0], [0], [1], [0, 0, 1, 1], [], []>} : vector<1x32xf32>, vector<32x256xf32>, vector<1x256xf32> -> vector<1x256xf32>
    %22 = vector.broadcast %20 : vector<1x1xf32> to vector<1x256xf32>
    %23 = arith.addf %21, %22 : vector<1x256xf32>
    %c0_20 = arith.constant 0 : index
    %c0_21 = arith.constant 0 : index
    %24 = vector.load %arg10[%c0_20, %c0_21] : memref<1x256xf32, #tpu.memory_space<vmem>>, vector<1x256xf32>
    tpu.vector_store %arg10[%c0_20, %c0_21], %23 {strides = array<i32>} : memref<1x256xf32, #tpu.memory_space<vmem>>, vector<1x256xf32>,
    return
  }
  func.func @transform_0(%arg0: i32) -> (i32, i32) {
    %c0_i32 = arith.constant 0 : i32
    %c0_i32_0 = arith.constant 0 : i32
    return %c0_i32, %arg0 : i32, i32
  }
  func.func @transform_1(%arg0: i32) -> (i32, i32) {
    %c0_i32 = arith.constant 0 : i32
    %c0_i32_0 = arith.constant 0 : i32
    %c0_i32_1 = arith.constant 0 : i32
    return %c0_i32, %c0_i32_0 : i32, i32
  }
  func.func @transform_2(%arg0: i32) -> (i32, i32) {
    %c0_i32 = arith.constant 0 : i32
    %c0_i32_0 = arith.constant 0 : i32
    %c0_i32_1 = arith.constant 0 : i32
    return %c0_i32, %c0_i32_0 : i32, i32
  }
  func.func @transform_3(%arg0: i32) -> (i32, i32) {
    %c0_i32 = arith.constant 0 : i32
    %c0_i32_0 = arith.constant 0 : i32
    %c0_i32_1 = arith.constant 0 : i32
    return %c0_i32, %c0_i32_0 : i32, i32
  }
  func.func @transform_4(%arg0: i32) -> (i32, i32) {
    %c0_i32 = arith.constant 0 : i32
    %c0_i32_0 = arith.constant 0 : i32
    %c0_i32_1 = arith.constant 0 : i32
    return %c0_i32, %c0_i32_0 : i32, i32
  }
  func.func @transform_5(%arg0: i32) -> (i32, i32) {
    %c0_i32 = arith.constant 0 : i32
    %c0_i32_0 = arith.constant 0 : i32
    %c0_i32_1 = arith.constant 0 : i32
    return %c0_i32, %c0_i32_0 : i32, i32
  }
  func.func @transform_6(%arg0: i32) -> (i32, i32) {
    %c0_i32 = arith.constant 0 : i32
    %c0_i32_0 = arith.constant 0 : i32
    %c0_i32_1 = arith.constant 0 : i32
    return %c0_i32, %c0_i32_0 : i32, i32
  }
  func.func @transform_7(%arg0: i32) -> (i32, i32) {
    %c0_i32 = arith.constant 0 : i32
    %c0_i32_0 = arith.constant 0 : i32
    %c0_i32_1 = arith.constant 0 : i32
    return %c0_i32, %c0_i32_0 : i32, i32
  }
  func.func @transform_8(%arg0: i32) -> (i32, i32) {
    %c0_i32 = arith.constant 0 : i32
    %c0_i32_0 = arith.constant 0 : i32
    %c0_i32_1 = arith.constant 0 : i32
    return %c0_i32, %c0_i32_0 : i32, i32
  }
  func.func @transform_9(%arg0: i32) -> (i32, i32) {
    %c0_i32 = arith.constant 0 : i32
    %c0_i32_0 = arith.constant 0 : i32
    return %c0_i32, %arg0 : i32, i32
  }
}

</mosaic_0001>

<bundles_post_ra>
// kernel: tpu_custom_call.1
= control target key start
LH: loop header
LB: loop body
LE: loop exit
PB: predicated region body
PF: predicated region fallthrough
CT: control target
= control target key end

     0   :  { %s1238_s0 = inlined_call_operand.vmem [shape: f32[2,512], index: 0, kind: input, shape index: {}]   ;;  %s1239_s1 = inlined_call_operand.vmem [shape: f32[32,2], index: 1, kind: input, shape index: {}]   ;;  %s1240_s2 = inlined_call_operand.vmem [shape: f32[32,1], index: 2, kind: input, shape index: {}]   ;;  %s1241_s3 = inlined_call_operand.vmem [shape: f32[32,32], index: 3, kind: input, shape index: {}]   ;;  %s1242_s4 = inlined_call_operand.vmem [shape: f32[32,1], index: 4, kind: input, shape index: {}]   ;;  %s1243_s5 = inlined_call_operand.vmem [shape: f32[32,32], index: 5, kind: input, shape index: {}]   ;;  %s1244_s6 = inlined_call_operand.vmem [shape: f32[32,1], index: 6, kind: input, shape index: {}]   ;;  %s1245_s7 = inlined_call_operand.vmem [shape: f32[1,32], index: 7, kind: input, shape index: {}]   ;;  %s1246_s8 = inlined_call_operand.<no memory space> [shape: f32[1,1], index: 8, kind: input, shape index: {}]   ;;  %s1247_s9 = inlined_call_operand.hbm [shape: f32[1,512], index: 9, kind: output, shape index: {}]  }
   0x1   :  { %v14_v0 = vstv %s1246_s8 }
   0x2   :  { %15 = vst [vmem:[#allocation2] sm:$0x1] %v14_v0 }
   0x3   :  { %16 = vsyncpa [#allocation4], 0 }
   0x4   :  { %18 = vsyncpa [#allocation4 + $0x1], 0  ;;  %s1053_s11 = smov 0   ;;  %s1055_s12 = smov 0  }
   0x5   :  { %s1057_s13 = smov 0   ;;  %s1059_s14 = smov 0  }
   0x6 LB: > { %s802_s8 = sadd.s32 4294967295, %s997_s14   ;;  %s803_s15 = sadd.s32 4294967294, %s997_s14   ;;  %s997_s14 = sphi %s1059_s14, %s1253_s14   ;;  %s993_s13 = sphi %s1057_s13, %s1252_s13   ;;  %s989_s12 = sphi %s1055_s12, %s1251_s12   ;;  %s985_s11 = sphi %s1053_s11, %s1250_s11  }
   0x7   : > { %s1076_s16 = sadd.s32 1, %s997_s14   ;;  %s225_s17 = sadd.s32 1, %s993_s13 }
   0x8   : > { %s222_s18 = ssub.s32 %s997_s14, %s1076_s16  ;;  %p235_p0 = scmp.ne.s32.totalorder %s993_s13, %s989_s12 }
   0x9   : > { %p223_p1 = scmp.eq.s32.totalorder %s222_s18, 0  ;;  %p236_p2 = scmp.eq.s32.totalorder %s802_s8, 1 }
   0xa   : > { %p241_p3 = scmp.ne.s32.totalorder %s989_s12, %s985_s11  ;;  %p242_p4 = scmp.eq.s32.totalorder %s803_s15, 1 }
   0xb   : > { %s1086_s19 = scalar_select %p223_p1, %s993_s13, %s225_s17  }
   0xc   : > { %p1088_p5 = por %p236_p2, %p235_p0  ;;  %p1092_p6 = por %p242_p4, %p241_p3 }
   0xd   : > { %p806_p7 = scmp.ge.s32.totalorder %s997_s14, 1  ;;  %p293_p8 = scmp.lt.s32.totalorder %s997_s14, 3 }
   0xf   : > { %p294_p9 = pnand %p806_p7, %p293_p8 }
  0x10   : > { %s1104_s26 = sshll.u32 (!%p294_p9), %s802_s8, 1  ;;  %s326_s25 = sand.u32 (!%p294_p9), 1, %s989_s12  }
  0x11   : > { %297 = sbr.rel (%p294_p9) target bundleno = 671 (0x29f), region = 56  ;;  %p330_p10 = scmp.lt.s32.totalorder (!%p294_p9), %s1104_s26, 3 }
  0x12   : > { %s739_s30 = scalar_lea.hbm (!%p294_p9), %s1247_s9, %s1104_s26  ;;  %s729_s8 = scalar_lea.sflag (!%p294_p9), [#allocation4], %s326_s25 }
  0x13   : > { %s743_s17 = sshll.u32 (!%p294_p9), %s739_s30, 4  ;;  %s955_s24 = scalar_lea.hbm (!%p294_p9), %s1247_s9, 4  ;;  %s744_s17 = int_to_ptr.hbm [resolvable:$true] %s743_s17 }
  0x14   : > { %s949_s18 = sshra.s32 (!%p294_p9), %s744_s17, 4  ;;  %s950_s18 = int_to_ptr.hbm [resolvable:$true] %s949_s18 }
  0x15   : > { %p956_p0 = scmp.lt.s32.totalorder (!%p294_p9), %s950_s18, %s1247_s9 }
  0x16   : > { %v344_v1 = vld [vmem:[%s1240_s2 + $0x18] sm:$0xff]  ;;  %v342_v2 = vld [vmem:[%s1240_s2 + $0x8] sm:$0xff]  ;;  %v999_v3 = vmov 0   ;;  %s331_s27 = scalar_select %p330_p10, %s1104_s26, 3  ;;  %v343_v4 = vld [vmem:[%s1240_s2 + $0x10] sm:$0xff]  ;;  %vm382_vm0 = vcmask 1041408  }
  0x17   : > { %884 = vset.pattern.permute.xlu0 %v999_v3  ;;  %885 = vset.pattern.permute.xlu1 %v999_v3  ;;  %v341_v6 = vld [vmem:[%s1240_s2] sm:$0xff]  ;;  %vm369_vm1 = vcmask 15360   ;;  %v340_v10 = vld [vmem:[%s1239_s1 + $0x18] sm:$0xff]  ;;  %v458_v11 = vld [vmem:[%s1242_s4 + $0x8] sm:$0xff]  ;;  %vm481_vm2 = vcmask 261120   ;;  %vm720_vm3 = vcmask 1040384  }
  0x18   : > { %362 = vperm.xlu0 %884, %v344_v1   ;;  %352 = vperm.xlu1 %885, %v342_v2   ;;  %s809_s28 = sshll.u32 %s331_s27, 1  ;;  %v337_v7 = vld [vmem:[%s1239_s1] sm:$0xff]  ;;  %v338_v13 = vld [vmem:[%s1239_s1 + $0x8] sm:$0xff]  ;;  %v566_v14 = vld [vmem:[%s1244_s6 + $0x10] sm:$0xff]  ;;  %s807_s27 = sshll.u32 %s326_s25, 1 }
  0x19   : > { %886 = vset.pattern.permute.xlu2 %v999_v3  ;;  %s333_s10 = scalar_lea.vmem %s1238_s0, %s809_s28  ;;  %v457_v12 = vld [vmem:[%s1242_s4] sm:$0xff]  ;;  %v565_v15 = vld [vmem:[%s1244_s6 + $0x8] sm:$0xff]  ;;  %v339_v16 = vld [vmem:[%s1239_s1 + $0x10] sm:$0xff]  ;;  %s951_s26 = scalar_lea.hbm %s950_s18, 2 }
  0x1a   : > { %v336_v5 = vld [vmem:[%s333_s10] sm:$0xf]  ;;  %v667_v17 = vld [vmem:[#allocation2] sm:$0x1]  ;;  %v460_v40 = vld [vmem:[%s1242_s4 + $0x18] sm:$0xff]  ;;  %s328_s10 = scalar_lea.vmem [#allocation3], %s807_s27  ;;  %p952_p11 = scmp.ne.s32.totalorder %s950_s18, %s951_s26 }
  0x1b   : > { %366 = vst [vmem:[#allocation1] ss:$4 sm:$0xff] %v336_v5  ;;  %478 = vperm.xlu2 %886, %v460_v40   ;;  %v453_v45 = vld [vmem:[%s1241_s3] sm:$0xff]  ;;  %v459_v48 = vld [vmem:[%s1242_s4 + $0x10] sm:$0xff]  ;;  %v454_v49 = vld [vmem:[%s1241_s3 + $0x8] sm:$0xff]  ;;  %s741_s15 = sshll.u32 %s328_s10, 4  ;;  %p957_p1 = scmp.lt.s32.totalorder %s955_s24, %s951_s26  ;;  %s742_s15 = int_to_ptr.vmem [resolvable:$true] %s741_s15 }
  0x1c   : > { %v567_v50 = vld [vmem:[%s1244_s6 + $0x18] sm:$0xff]  ;;  %v455_v51 = vld [vmem:[%s1241_s3 + $0x10] sm:$0xff]  ;;  %v564_v52 = vld [vmem:[%s1244_s6] sm:$0xff]  ;;  %p953_p12 = pnand %p952_p11, %p1088_p5 }
  0x1d   : > { %v456_v53 = vld [vmem:[%s1241_s3 + $0x18] sm:$0xff]  ;;  %p958_p2 = por %p957_p1, %p956_p0 }
  0x1e   : > { %p954_p13 = pneg %p953_p12 }
  0x20   : > { %357 = vperm.xlu0 %884, %v343_v4   ;;  %347 = vperm.xlu1 %885, %v341_v6   ;;  %p959_p3 = pnand %p958_p2, %p954_p13 }
  0x22   : > { %v367_v8 = vld.sshfl [vmem:[#allocation1] sm:$0xff pattern:$0x73625140]  ;;  %v368_v9 = vld.sshfl [vmem:[#allocation1 + $0x8] sm:$0xff pattern:$0x73625140] }
  0x23   : > { %810 = vmatpush.msk.msra.mxu0 %vm382_vm0, %v367_v8  ;;  %815 = vmatpush.msk.msra.mxu1 %vm382_vm0, %v368_v9 }
  0x24   : > { %811 = vmatmul.msk.f32.vlgmr.msra.gmra.mxu0 %vm369_vm1, %v337_v7  ;;  %816 = vmatmul.msk.f32.vlgmr.msra.gmra.mxu1 %vm369_vm1, %v337_v7 }
  0x25   : > { %842 = vmatpush.msk.msra.mxu2 %vm382_vm0, %v367_v8  ;;  %843 = vmatpush.msk.msra.mxu3 %vm382_vm0, %v368_v9 }
  0x26   : > { %814 = vmatmul.msk.f32.vlgmr.msra.gmra.mxu2 %vm369_vm1, %v340_v10  ;;  %819 = vmatmul.msk.f32.vlgmr.msra.gmra.mxu3 %vm369_vm1, %v340_v10 }
  0x27   : > { %473 = vperm.xlu2 %886, %v459_v48   ;;  %v666_v48 = vld [vmem:[%s1245_s7] sm:$0x1] }
  0x28   : > { %468 = vperm.xlu0 %884, %v458_v11   ;;  %463 = vperm.xlu1 %885, %v457_v12  }
  0x2c   : > { %812 = vmatmul.msk.f32.gmra.mxu0 %vm369_vm1, %v338_v13  ;;  %817 = vmatmul.msk.f32.gmra.mxu1 %vm369_vm1, %v338_v13 }
  0x2f   : > { %585 = vperm.xlu2 %886, %v567_v50  }
  0x30   : > { %580 = vperm.xlu0 %884, %v566_v14   ;;  %575 = vperm.xlu1 %885, %v565_v15  }
  0x34   : > { %813 = vmatmul.msk.f32.gmra.mxu0 %vm369_vm1, %v339_v16  ;;  %818 = vmatmul.msk.f32.gmra.mxu1 %vm369_vm1, %v339_v16  ;;  %v560_v16 = vld [vmem:[%s1243_s5] sm:$0xff] }
  0x37   : > { %570 = vperm.xlu2 %886, %v564_v52  }
  0x38   : > { %670 = vperm.xlu0 %884, %v667_v17  }
  0x75   : > { %v479_v58 = vpop.permute.xlu2 %478 }
  0x81   : > { %v474_v61 = vpop.permute.xlu2 %473 }
  0x8a   : > { %v363_v20 = vpop.permute.xlu0 %362  ;;  %v353_v21 = vpop.permute.xlu1 %352 }
  0x92   : > { %v358_v28 = vpop.permute.xlu0 %357  ;;  %v348_v34 = vpop.permute.xlu1 %347 }
  0x9a   : > { %v469_v2 = vpop.permute.xlu0 %468  ;;  %v464_v6 = vpop.permute.xlu1 %463 }
  0xa1   : > { %v404_v18 = vpop.f32.mrf.mxu0  ;;  %v433_v19 = vpop.f32.mrf.mxu1 }
  0xa2   : > { %v405_v37 = vadd.f32 %v404_v18, %v348_v34  ;;  %v434_v39 = vadd.f32 %v433_v19, %v348_v34  ;;  %v561_v19 = vld [vmem:[%s1243_s5 + $0x8] sm:$0xff]  ;;  %v576_v34 = vpop.permute.xlu1 %575 }
  0xa9   : > { %v407_v22 = vpop.f32.mrf.mxu0  ;;  %v413_v23 = vpop.f32.mrf.mxu2 }
  0xaa   : > { %v436_v24 = vpop.f32.mrf.mxu1  ;;  %v414_v25 = vadd.f32 %v413_v23, %v363_v20  ;;  %v442_v26 = vpop.f32.mrf.mxu3  ;;  %v408_v30 = vadd.f32 %v407_v22, %v353_v21 }
  0xab   : > { %v443_v27 = vadd.f32 %v442_v26, %v363_v20  ;;  %v437_v35 = vadd.f32 %v436_v24, %v353_v21  ;;  %v562_v20 = vld [vmem:[%s1243_s5 + $0x10] sm:$0xff]  ;;  %v563_v21 = vld [vmem:[%s1243_s5 + $0x18] sm:$0xff] }
  0xac   : > { %887 = vtanh.f32 %v414_v25 }
  0xad   : > { %889 = vtanh.f32 %v443_v27 }
  0xb1   : > { %v410_v29 = vpop.f32.mrf.mxu0 }
  0xb2   : > { %v411_v31 = vadd.f32 %v410_v29, %v358_v28  ;;  %v439_v32 = vpop.f32.mrf.mxu1  ;;  %v888_v33 = vpop.eup %887 }
  0xb3   : > { %v440_v36 = vadd.f32 %v439_v32, %v358_v28  ;;  %506 = vmatpush.msrb.mxu2 %v888_v33  ;;  %v890_v38 = vpop.eup %889  ;;  %v586_v28 = vpop.permute.xlu2 %585 }
  0xb4   : > { %891 = vtanh.f32 %v411_v31  ;;  %535 = vmatpush.msrb.mxu3 %v890_v38  ;;  %v581_v29 = vpop.permute.xlu0 %580 }
  0xb5   : > { %893 = vtanh.f32 %v440_v36 }
  0xb6   : > { %895 = vtanh.f32 %v408_v30 }
  0xb7   : > { %897 = vtanh.f32 %v437_v35 }
  0xb8   : > { %899 = vtanh.f32 %v405_v37 }
  0xb9   : > { %901 = vtanh.f32 %v434_v39 }
  0xba   : > { %v892_v41 = vpop.eup %891 }
  0xbb   : > { %v894_v42 = vpop.eup %893  ;;  %507 = vmatpush.msrb.mxu2 %v892_v41  ;;  %v571_v38 = vpop.permute.xlu2 %570 }
  0xbc   : > { %v896_v43 = vpop.eup %895  ;;  %536 = vmatpush.msrb.mxu3 %v894_v42 }
  0xbd   : > { %v898_v44 = vpop.eup %897  ;;  %508 = vmatpush.msrb.mxu2 %v896_v43 }
  0xbe   : > { %v900_v46 = vpop.eup %899  ;;  %537 = vmatpush.msrb.mxu3 %v898_v44 }
  0xbf   : > { %v902_v47 = vpop.eup %901  ;;  %509 = vmatpush.msrb.mxu2 %v900_v46 }
  0xc0   : > { %538 = vmatpush.msrb.mxu3 %v902_v47  ;;  %820 = vmatmul.msk.f32.vlgmr.msrb.gmra.mxu2 %vm481_vm2, %v453_v45 }
  0xc1   : > { %824 = vmatmul.msk.f32.vlgmr.msrb.gmra.mxu3 %vm481_vm2, %v453_v45 }
  0xc8   : > { %821 = vmatmul.msk.f32.gmra.mxu2 %vm481_vm2, %v454_v49 }
  0xc9   : > { %825 = vmatmul.msk.f32.gmra.mxu3 %vm481_vm2, %v454_v49 }
  0xd0   : > { %822 = vmatmul.msk.f32.gmra.mxu2 %vm481_vm2, %v455_v51 }
  0xd1   : > { %826 = vmatmul.msk.f32.gmra.mxu3 %vm481_vm2, %v455_v51  ;;  %v671_v51 = vpop.permute.xlu0 %670 }
  0xd2   : > { %v673_v52 = vperm.slane %v671_v51, 0 }
  0xd8   : > { %823 = vmatmul.msk.f32.gmra.mxu2 %vm481_vm2, %v456_v53 }
  0xd9   : > { %827 = vmatmul.msk.f32.gmra.mxu3 %vm481_vm2, %v456_v53  ;;  %v723_v53 = vlaneseq }
  0xdb   : > { %vm725_vm4 = vcmp.lt.s32.totalorder %v723_v53, 256 }
 0x143   : > { %v511_v54 = vpop.f32.mrf.mxu2 }
 0x144   : > { %v540_v55 = vpop.f32.mrf.mxu3  ;;  %v512_v8 = vadd.f32 %v511_v54, %v464_v6 }
 0x145   : > { %v541_v9 = vadd.f32 %v540_v55, %v464_v6 }
 0x14b   : > { %v514_v56 = vpop.f32.mrf.mxu2 }
 0x14c   : > { %v543_v57 = vpop.f32.mrf.mxu3  ;;  %v515_v5 = vadd.f32 %v514_v56, %v469_v2 }
 0x14d   : > { %v544_v7 = vadd.f32 %v543_v57, %v469_v2 }
 0x153   : > { %v517_v59 = vpop.f32.mrf.mxu2 }
 0x154   : > { %v546_v60 = vpop.f32.mrf.mxu3  ;;  %v518_v63 = vadd.f32 %v517_v59, %v474_v61 }
 0x155   : > { %v547_v3 = vadd.f32 %v546_v60, %v474_v61 }
 0x15b   : > { %v520_v62 = vpop.f32.mrf.mxu2 }
 0x15c   : > { %v521_v0 = vadd.f32 %v520_v62, %v479_v58  ;;  %v549_v1 = vpop.f32.mrf.mxu3 }
 0x15d   : > { %v550_v4 = vadd.f32 %v549_v1, %v479_v58 }
 0x15e   : > { %903 = vtanh.f32 %v521_v0 }
 0x15f   : > { %905 = vtanh.f32 %v550_v4 }
 0x160   : > { %907 = vtanh.f32 %v518_v63 }
 0x161   : > { %909 = vtanh.f32 %v547_v3 }
 0x162   : > { %911 = vtanh.f32 %v515_v5 }
 0x163   : > { %913 = vtanh.f32 %v544_v7 }
 0x164   : > { %v904_v10 = vpop.eup %903  ;;  %915 = vtanh.f32 %v512_v8 }
 0x165   : > { %v906_v11 = vpop.eup %905  ;;  %917 = vtanh.f32 %v541_v9  ;;  %612 = vmatpush.msrb.mxu0 %v904_v10 }
 0x166   : > { %v908_v12 = vpop.eup %907  ;;  %641 = vmatpush.msrb.mxu1 %v906_v11 }
 0x167   : > { %v910_v13 = vpop.eup %909  ;;  %613 = vmatpush.msrb.mxu0 %v908_v12 }
 0x168   : > { %v912_v14 = vpop.eup %911  ;;  %642 = vmatpush.msrb.mxu1 %v910_v13 }
 0x169   : > { %v914_v15 = vpop.eup %913  ;;  %614 = vmatpush.msrb.mxu0 %v912_v14 }
 0x16a   : > { %v916_v17 = vpop.eup %915  ;;  %643 = vmatpush.msrb.mxu1 %v914_v15 }
 0x16b   : > { %v918_v18 = vpop.eup %917  ;;  %615 = vmatpush.msrb.mxu0 %v916_v17 }
 0x16c   : > { %644 = vmatpush.msrb.mxu1 %v918_v18  ;;  %828 = vmatmul.msk.f32.vlgmr.msrb.gmra.mxu0 %vm481_vm2, %v560_v16 }
 0x16d   : > { %832 = vmatmul.msk.f32.vlgmr.msrb.gmra.mxu1 %vm481_vm2, %v560_v16 }
 0x174   : > { %829 = vmatmul.msk.f32.gmra.mxu0 %vm481_vm2, %v561_v19 }
 0x175   : > { %833 = vmatmul.msk.f32.gmra.mxu1 %vm481_vm2, %v561_v19 }
 0x17c   : > { %830 = vmatmul.msk.f32.gmra.mxu0 %vm481_vm2, %v562_v20 }
 0x17d   : > { %834 = vmatmul.msk.f32.gmra.mxu1 %vm481_vm2, %v562_v20 }
 0x184   : > { %831 = vmatmul.msk.f32.gmra.mxu0 %vm481_vm2, %v563_v21 }
 0x185   : > { %835 = vmatmul.msk.f32.gmra.mxu1 %vm481_vm2, %v563_v21 }
 0x1e9   : > { %v617_v22 = vpop.f32.mrf.mxu0 }
 0x1ea   : > { %v646_v23 = vpop.f32.mrf.mxu1  ;;  %v618_v40 = vadd.f32 %v617_v22, %v571_v38 }
 0x1eb   : > { %v647_v41 = vadd.f32 %v646_v23, %v571_v38 }
 0x1f1   : > { %v620_v24 = vpop.f32.mrf.mxu0 }
 0x1f2   : > { %v649_v25 = vpop.f32.mrf.mxu1  ;;  %v621_v37 = vadd.f32 %v620_v24, %v576_v34 }
 0x1f3   : > { %v650_v39 = vadd.f32 %v649_v25, %v576_v34 }
 0x1f9   : > { %v623_v26 = vpop.f32.mrf.mxu0 }
 0x1fa   : > { %v652_v27 = vpop.f32.mrf.mxu1  ;;  %v624_v31 = vadd.f32 %v623_v26, %v581_v29 }
 0x1fb   : > { %v653_v35 = vadd.f32 %v652_v27, %v581_v29 }
 0x201   : > { %v626_v30 = vpop.f32.mrf.mxu0 }
 0x202   : > { %v627_v32 = vadd.f32 %v626_v30, %v586_v28  ;;  %v655_v33 = vpop.f32.mrf.mxu1 }
 0x203   : > { %v656_v36 = vadd.f32 %v655_v33, %v586_v28 }
 0x204   : > { %919 = vtanh.f32 %v627_v32 }
 0x205   : > { %921 = vtanh.f32 %v656_v36 }
 0x206   : > { %923 = vtanh.f32 %v624_v31 }
 0x207   : > { %925 = vtanh.f32 %v653_v35 }
 0x208   : > { %927 = vtanh.f32 %v621_v37 }
 0x209   : > { %929 = vtanh.f32 %v650_v39 }
 0x20a   : > { %v920_v42 = vpop.eup %919  ;;  %931 = vtanh.f32 %v618_v40 }
 0x20b   : > { %v922_v43 = vpop.eup %921  ;;  %933 = vtanh.f32 %v647_v41  ;;  %689 = vmatpush.msra.mxu2 %v920_v42 }
 0x20c   : > { %v924_v44 = vpop.eup %923  ;;  %709 = vmatpush.msra.mxu3 %v922_v43 }
 0x20d   : > { %v926_v45 = vpop.eup %925  ;;  %690 = vmatpush.msra.mxu2 %v924_v44 }
 0x20e   : > { %v928_v46 = vpop.eup %927  ;;  %710 = vmatpush.msra.mxu3 %v926_v45 }
 0x20f   : > { %v930_v47 = vpop.eup %929  ;;  %691 = vmatpush.msra.mxu2 %v928_v46 }
 0x210   : > { %v932_v49 = vpop.eup %931  ;;  %711 = vmatpush.msra.mxu3 %v930_v47 }
 0x211   : > { %v934_v50 = vpop.eup %933  ;;  %692 = vmatpush.msra.mxu2 %v932_v49 }
 0x212   : > { %712 = vmatpush.msra.mxu3 %v934_v50  ;;  %836 = vmatmul.msk.f32.vlgmr.msra.gmra.mxu2 %vm481_vm2, %v666_v48 }
 0x213   : > { %837 = vmatmul.msk.f32.vlgmr.msra.gmra.mxu3 %vm481_vm2, %v666_v48 }
 0x295   : > { %v694_v54 = vpop.f32.mrf.mxu2 }
 0x296   : > { %v714_v55 = vpop.f32.mrf.mxu3  ;;  %v695_v57 = vadd.f32 %v694_v54, %v673_v52 }
 0x297   : > { %v715_v56 = vadd.f32 %v714_v55, %v673_v52 }
 0x299   : > { %v719_v58 = vrot.slane %v715_v56, 7 }
 0x29b   : > { %v721_v59 = vsel %vm720_vm3, %v695_v57, %v719_v58 }
 0x29c   : > { %727 = vst.msk [vmem:[%s328_s10] sm:$0x3] %vm725_vm4, %v721_v59 }
 0x29d   : > { %962 = shalt.err (!%p959_p3)
}
 0x29e   : > { %844 = dma.vmem_to_hbm [thread:$0]  (%p1088_p5), %s742_s15, 32, %s744_s17, %s729_s8  }
 0x29f PF: > { %p850_p4 = scmp.ge.s32.totalorder %s997_s14, 2  ;;  %s755_s25 = sand.u32 1, %s985_s11  }
 0x2a0   : > { %s756_s29 = scalar_lea.sflag [#allocation4], %s755_s25 }
 0x2a1   : > { %p847_p7 = pnand %p850_p4, %p1092_p6 }
 0x2a3   : > { %p848_p8 = pneg %p847_p7 }
 0x2a5   : > { %980 = dma.done.wait (%p848_p8), %s756_s29, 32  }
 0x2a6   : > { %982 = vsyncadd (%p848_p8), %s756_s29, 4294967264  ;;  %p21_p9 = scmp.ge.s32.totalorder %s1076_s16, 4   ;;  %s1250_s11 = smov %s989_s12 }
 0x2a7   : > { %s1251_s12 = smov %s993_s13  ;;  %s1252_s13 = smov %s1086_s19 }
 0x2a8   : > { %s1253_s14 = smov %s1076_s16  ;;  %23 = sbr.rel (!%p21_p9) target bundleno = 6 (0x6), region = 91 }
 0x2ad   :  { %762 = vsyncpa [#allocation4], 1 }
 0x2ae   :  { %764 = vsyncpa [#allocation4 + $0x1], 1 }

</bundles_post_ra>
